<compile_context>
chip_gen: v7x
topology: tpu7x:2x2x1
jax: 0.10.0
libtpu: 0.0.40
codegen_flags: <defaults>
</compile_context>

<pallas_src>
import math
import numpy as np
import jax
import jax.numpy as jnp
from jax.experimental import pallas as pl
from jax.experimental.pallas import tpu as pltpu

DIM_DESC = 256  # EmbeddingNet default dim_desc


# ----------------------------- fused Pallas kernel -----------------------------

def _ldm_fused_kernel(x_ref, w_ref, emb_ref, gram_ref):
    """x_ref: (N, Din) bf16 stacked [p; a]; w_ref: (Din, Dout) bf16.

    emb_ref : (N, Dout) f32  row-l2-normalized embeddings (lane-dense output).
    gram_ref: (N, N)    f32  Gram matrix of the bf16-cast embeddings.
    """
    # 1) embedding projection: bf16 operands, fp32 accumulation on the MXU.
    y = jax.lax.dot_general(
        x_ref[...], w_ref[...],
        dimension_numbers=(((1,), (0,)), ((), ())),
        preferred_element_type=jnp.float32)                      # (N, Dout) f32

    # 2) row-wise l2 normalization (EmbeddingNet: l2_norm).
    #    rsqrt routes to the EUP slot; eps guards 0/0 for an all-zero row.
    inv_norm = jax.lax.rsqrt(jnp.sum(y * y, axis=-1, keepdims=True) + 1e-12)
    e = y * inv_norm
    emb_ref[...] = e

    # 3) Gram matrix of all embeddings, contracting the last axes of BOTH operands
    #    (no transpose -> no XLU vxpose before the MXU push). diag(G) gives the exact
    #    squared norms of the bf16 embeddings, so the glue reconstructs all pairwise
    #    distances as sqrt(max(0, n_i + n_j - 2*G_ij)).
    e_bf = e.astype(jnp.bfloat16)
    gram_ref[...] = jax.lax.dot_general(
        e_bf, e_bf,
        dimension_numbers=(((1,), (1,)), ((), ())),
        preferred_element_type=jnp.float32)                      # (N, N) f32


def _ldm_fused_call(x, w):
    n, din = x.shape
    dout = w.shape[1]
    return pl.pallas_call(
        _ldm_fused_kernel,
        out_shape=(jax.ShapeDtypeStruct((n, dout), jnp.float32),
                   jax.ShapeDtypeStruct((n, n), jnp.float32)),
        grid=(1,),
        in_specs=[
            pl.BlockSpec((n, din), lambda i: (0, 0)),
            pl.BlockSpec((din, dout), lambda i: (0, 0)),
        ],
        out_specs=(
            pl.BlockSpec((n, dout), lambda i: (0, 0)),
            pl.BlockSpec((n, n), lambda i: (0, 0)),
        ),
        compiler_params=pltpu.CompilerParams(
            dimension_semantics=("arbitrary",)),
    )(x, w)


# ----------------------------- LDMNet (glue) -----------------------------

def _offdiag_idx(b):
    # row-major off-diagonal indices, matches torch boolean-mask flattening
    rows, cols = np.nonzero(~np.eye(b, dtype=bool))
    return rows, cols


class LDMNetPallas:
    def __init__(self, w_embed, m=0.5):
        # bf16 weights for the native MXU path (fp32 accumulation in-kernel).
        self.w = jnp.asarray(w_embed, dtype=jnp.bfloat16)
        self.sin_m = math.sin(m)
        self.mm = self.sin_m * m
        self.cos_m = math.cos(m)
        self.thresh = math.cos(math.pi - m)
        self.s = 64.0
        self.beta = 0.0

    # EmbeddingNet.forward / LDMNet.get_embedding
    def get_embedding(self, patch):
        b = patch.shape[0]
        x = patch.reshape(b, -1).astype(jnp.bfloat16)     # NCHW -> (B, C*H*W)
        emb, _ = _ldm_fused_call(x, self.w)
        return emb

    def forward(self, p, a, label):
        b = p.shape[0]
        xp = p.reshape(b, -1).astype(jnp.bfloat16)
        xa = a.reshape(b, -1).astype(jnp.bfloat16)
        x = jnp.concatenate([xp, xa], axis=0)             # (2B, Din): 2x MXU rows

        emb, gram = _ldm_fused_call(x, self.w)            # single fused kernel
        pe, ae = emb[:b], emb[b:]

        # Gram blocks and exact squared norms of the bf16 embeddings.
        g_pp = gram[:b, :b]
        g_pa = gram[:b, b:]                               # pe @ ae^T
        g_aa = gram[b:, b:]
        sq = jnp.diagonal(gram)
        sq_p, sq_a = sq[:b], sq[b:]

        # ||x - y|| = sqrt(max(0, |x|^2 + |y|^2 - 2 x.y)); clamp guards rounding.
        d_pa_sq = sq_p[:, None] + sq_a[None, :] - 2.0 * g_pa
        d_pp_sq = sq_p[:, None] + sq_p[None, :] - 2.0 * g_pp
        d_aa_sq = sq_a[:, None] + sq_a[None, :] - 2.0 * g_aa
        Dpa = jnp.sqrt(jnp.maximum(d_pa_sq, 0.0))         # ||pe[i] - ae[j]||
        Dpp = jnp.sqrt(jnp.maximum(d_pp_sq, 0.0))         # ||pe[i] - pe[j]||
        Daa = jnp.sqrt(jnp.maximum(d_aa_sq, 0.0))         # ||ae[i] - ae[j]||

        angles = self._arc(g_pa, label)
        loss_l2 = self._loss_l2_hard(Dpa, Dpp, Daa, margin=1.0)
        loss_arc = self._cross_entropy(angles, label)
        t_loss = loss_l2 + self.beta * loss_arc
        return t_loss, angles, pe, ae

    def _cross_entropy(self, logit, label):
        logprobs = jax.nn.log_softmax(logit, axis=1)
        return -(label * logprobs).sum() / logit.shape[0]

    def _arc(self, G, label):
        bs = G.shape[0]
        rows, cols = _offdiag_idx(bs)
        angles1 = G                                        # pe @ ae.T
        angles2 = G.T[rows, cols].reshape(bs, bs - 1)      # (ae @ pe.T)[off-diag]
        angles = jnp.concatenate([angles1, angles2], axis=-1)
        angles = jnp.clip(angles, -1.0, 1.0)
        # reuse diag(G) for cos_pa instead of re-reducing pe*ae
        cos_pa = jnp.clip(jnp.diagonal(G), -1.0, 1.0)
        sin_pa = jnp.sqrt(jnp.maximum(1.0 - cos_pa ** 2, 0.0))
        cos_pa_m = cos_pa * self.cos_m - sin_pa * self.sin_m
        cosface = cos_pa - self.mm
        cos_pa_m = jnp.where(cos_pa - self.thresh <= 0, cosface, cos_pa_m)
        # torch: angles[label == 1] = cos_pa_m  (one positive per row, at column i)
        angles = jnp.where(label == 1, cos_pa_m[:, None], angles)
        return angles * self.s

    def _loss_l2_hard(self, Dpa, Dpp, Daa, margin=1.0):
        bs = Dpa.shape[0]
        rows, cols = _offdiag_idx(bs)
        d_pa = jnp.diagonal(Dpa)[:, None]                  # distance_pa(pe, ae)

        # distance_n(pe, ae)  -- note the arg/param name swap inside the torch code
        dist_pe1_ae2 = Dpa[rows, cols].reshape(bs, bs - 1)   # ||ae[j] - pe[i]||, j != i
        dist_pe2_ae1 = Dpa.T[rows, cols].reshape(bs, bs - 1) # ||ae[i] - pe[j]||, j != i
        d_n_all = jnp.concatenate([dist_pe1_ae2, dist_pe2_ae1], axis=-1)
        d_n = jnp.min(d_n_all, axis=-1, keepdims=True)       # topk(k=1, largest=False)

        # sos term
        dist_pe = Daa[rows, cols].reshape(bs, bs - 1)        # ||ae[j] - ae[i]||
        dist_ae = Dpp[rows, cols].reshape(bs, bs - 1)        # ||pe[j] - pe[i]||
        diff = (dist_pe - dist_ae) ** 2
        idx_pe = jnp.argmin(dist_pe, axis=-1)
        idx_ae = jnp.argmin(dist_ae, axis=-1)
        ridx = jnp.arange(bs)
        s1 = diff[ridx, idx_pe]
        # torch .unique() on the 2-element index tensor == dedup on equal indices
        s2 = jnp.where(idx_ae == idx_pe, 0.0, diff[ridx, idx_ae])
        sos_val = jnp.mean(jnp.sqrt(s1 + s2))

        diff_h = jax.nn.relu(d_pa - d_n + margin).squeeze()
        return jnp.sum(diff_h ** 2) / bs + sos_val


# ----------------------------- demo / smoke test -----------------------------

if __name__ == "__main__":
    key = jax.random.PRNGKey(0)
    k_w, k_p, k_a = jax.random.split(key, 3)

    bs, C, H, W = 8, 1, 16, 16         # C*H*W == 256 input features
    w_embed = jax.random.normal(k_w, (C * H * W, DIM_DESC), dtype=jnp.float32) * 0.05

    p = jax.random.normal(k_p, (bs, C, H, W), dtype=jnp.float32)
    a = jax.random.normal(k_a, (bs, C, H, W), dtype=jnp.float32)
    # one-hot label over (bs, 2*bs - 1) logits: positive class is column i for row i
    label = jnp.zeros((bs, 2 * bs - 1), dtype=jnp.float32)
    label = label.at[jnp.arange(bs), jnp.arange(bs)].set(1.0)

    net = LDMNetPallas(w_embed, m=0.5)
    fwd = jax.jit(net.forward)
    t_loss, angles, pe, ae = fwd(p, a, label)

    jax.block_until_ready((t_loss, angles, pe, ae))
    assert angles.shape == (bs, 2 * bs - 1)
    assert pe.shape == (bs, DIM_DESC) and ae.shape == (bs, DIM_DESC)
    assert bool(jnp.isfinite(t_loss))
    print("KERNEL_OK")
</pallas_src>

<mosaic_0001>
module attributes {stable_mosaic.version = 11 : i64} {
  func.func @_ldm_fused_kernel(%arg0: i32, %arg1: memref<16x256xbf16, #tpu.memory_space<vmem>>, %arg2: memref<256x256xbf16, #tpu.memory_space<vmem>>, %arg3: memref<16x256xf32, #tpu.memory_space<vmem>>, %arg4: memref<16x16xf32, #tpu.memory_space<vmem>>) attributes {dimension_semantics = [#tpu.dimension_semantics<arbitrary>], iteration_bounds = array<i64: 1>, scalar_prefetch = 0 : i64, scratch_operands = 0 : i64, tpu.core_type = #tpu.core_type<tc>, window_params = [{pipeline_mode = #tpu.pipeline_mode<synchronous>, transform_indices = @transform_0, window_bounds = array<i64: 16, 256>}, {pipeline_mode = #tpu.pipeline_mode<synchronous>, transform_indices = @transform_1, window_bounds = array<i64: 256, 256>}, {pipeline_mode = #tpu.pipeline_mode<synchronous>, transform_indices = @transform_2, window_bounds = array<i64: 16, 256>}, {pipeline_mode = #tpu.pipeline_mode<synchronous>, transform_indices = @transform_3, window_bounds = array<i64: 16, 16>}]} {
    %c0 = arith.constant 0 : index
    %c0_0 = arith.constant 0 : index
    %0 = vector.load %arg1[%c0, %c0_0] : memref<16x256xbf16, #tpu.memory_space<vmem>>, vector<16x256xbf16>
    %c0_1 = arith.constant 0 : index
    %c0_2 = arith.constant 0 : index
    %1 = vector.load %arg2[%c0_1, %c0_2] : memref<256x256xbf16, #tpu.memory_space<vmem>>, vector<256x256xbf16>
    %cst = arith.constant dense<0.000000e+00> : vector<16x256xf32>
    %2 = tpu.matmul %0, %1, %cst {dimension_numbers = #tpu.dot_dimension_numbers<[1], [0], [0], [1], [0, 0, 1, 1], [], []>} : vector<16x256xbf16>, vector<256x256xbf16>, vector<16x256xf32> -> vector<16x256xf32>
    %3 = arith.mulf %2, %2 : vector<16x256xf32>
    %cst_3 = arith.constant dense<0.000000e+00> : vector<16xf32>
    %4 = vector.multi_reduction <add>, %3, %cst_3 [1] : vector<16x256xf32> to vector<16xf32>
    %5 = vector.shape_cast %4 : vector<16xf32> to vector<16x1xf32>
    %cst_4 = arith.constant 9.99999996E-13 : f32
    %6 = vector.broadcast %cst_4 : f32 to vector<16x1xf32>
    %7 = arith.addf %5, %6 : vector<16x1xf32>
    %8 = math.rsqrt %7 : vector<16x1xf32>
    %9 = vector.broadcast %8 : vector<16x1xf32> to vector<16x256xf32>
    %10 = arith.mulf %2, %9 : vector<16x256xf32>
    %c0_5 = arith.constant 0 : index
    %c0_6 = arith.constant 0 : index
    %11 = vector.load %arg3[%c0_5, %c0_6] : memref<16x256xf32, #tpu.memory_space<vmem>>, vector<16x256xf32>
    tpu.vector_store %arg3[%c0_5, %c0_6], %10 {strides = array<i32>} : memref<16x256xf32, #tpu.memory_space<vmem>>, vector<16x256xf32>,
    %12 = arith.truncf %10 : vector<16x256xf32> to vector<16x256xbf16>
    %cst_7 = arith.constant dense<0.000000e+00> : vector<16x16xf32>
    %13 = tpu.matmul %12, %12, %cst_7 {dimension_numbers = #tpu.dot_dimension_numbers<[1], [1], [0], [0], [0, 0, 1, 0], [], []>} : vector<16x256xbf16>, vector<16x256xbf16>, vector<16x16xf32> -> vector<16x16xf32>
    %c0_8 = arith.constant 0 : index
    %c0_9 = arith.constant 0 : index
    %14 = vector.load %arg4[%c0_8, %c0_9] : memref<16x16xf32, #tpu.memory_space<vmem>>, vector<16x16xf32>
    tpu.vector_store %arg4[%c0_8, %c0_9], %13 {strides = array<i32>} : memref<16x16xf32, #tpu.memory_space<vmem>>, vector<16x16xf32>,
    return
  }
  func.func @transform_0(%arg0: i32) -> (i32, i32) {
    %c0_i32 = arith.constant 0 : i32
    %c0_i32_0 = arith.constant 0 : i32
    %c0_i32_1 = arith.constant 0 : i32
    return %c0_i32, %c0_i32_0 : i32, i32
  }
  func.func @transform_1(%arg0: i32) -> (i32, i32) {
    %c0_i32 = arith.constant 0 : i32
    %c0_i32_0 = arith.constant 0 : i32
    %c0_i32_1 = arith.constant 0 : i32
    return %c0_i32, %c0_i32_0 : i32, i32
  }
  func.func @transform_2(%arg0: i32) -> (i32, i32) {
    %c0_i32 = arith.constant 0 : i32
    %c0_i32_0 = arith.constant 0 : i32
    %c0_i32_1 = arith.constant 0 : i32
    return %c0_i32, %c0_i32_0 : i32, i32
  }
  func.func @transform_3(%arg0: i32) -> (i32, i32) {
    %c0_i32 = arith.constant 0 : i32
    %c0_i32_0 = arith.constant 0 : i32
    %c0_i32_1 = arith.constant 0 : i32
    return %c0_i32, %c0_i32_0 : i32, i32
  }
}

</mosaic_0001>

<bundles_post_ra>
// kernel: forward.1
= control target key start
LH: loop header
LB: loop body
LE: loop exit
PB: predicated region body
PF: predicated region fallthrough
CT: control target
= control target key end

     0   :  { %vm326_vm0 = vcmask 130048   ;;  %s566_s1 = inlined_call_operand.vmem [shape: bf16[256,256], index: 1, kind: input, shape index: {}]   ;;  %s567_s0 = inlined_call_operand.vmem [shape: bf16[16,256], index: 0, kind: input, shape index: {}]   ;;  %s568_s2 = inlined_call_operand.vmem [shape: f32[16,256], index: 2, kind: output, shape index: {0}]   ;;  %s569_s3 = inlined_call_operand.vmem [shape: f32[16,16], index: 3, kind: output, shape index: {1}]  }
   0x1   :  { %v371_v0 = vld [vmem:[%s566_s1 + $0x4] ss:$8 sps:$4 sm:$0xff]   ;;  %v373_v1 = vld [vmem:[%s566_s1] ss:$8 sps:$4 sm:$0xff]   ;;  %v374_v2 = vld [vmem:[%s566_s1 + $0x14] ss:$8 sps:$4 sm:$0xff]  }
   0x2   :  { %218 = vmatprep.subr.bf16.mxu0 %v371_v0  ;;  %v376_v3 = vld [vmem:[%s566_s1 + $0x10] ss:$8 sps:$4 sm:$0xff]   ;;  %v377_v4 = vld [vmem:[%s566_s1 + $0x24] ss:$8 sps:$4 sm:$0xff]   ;;  %v379_v5 = vld [vmem:[%s566_s1 + $0x20] ss:$8 sps:$4 sm:$0xff]  }
   0x3   :  { %219 = vmatpush1.bf16.msra.mxu0 %v373_v1  ;;  %v380_v6 = vld [vmem:[%s566_s1 + $0x34] ss:$8 sps:$4 sm:$0xff]   ;;  %v382_v7 = vld [vmem:[%s566_s1 + $0x30] ss:$8 sps:$4 sm:$0xff]   ;;  %v383_v8 = vld [vmem:[%s566_s1 + $0x44] ss:$8 sps:$4 sm:$0xff]  }
   0x4   :  { %220 = vmatprep.subr.bf16.mxu0 %v374_v2  ;;  %v385_v9 = vld [vmem:[%s566_s1 + $0x40] ss:$8 sps:$4 sm:$0xff]   ;;  %v386_v10 = vld [vmem:[%s566_s1 + $0x54] ss:$8 sps:$4 sm:$0xff]   ;;  %v388_v11 = vld [vmem:[%s566_s1 + $0x50] ss:$8 sps:$4 sm:$0xff]  }
   0x5   :  { %v389_v12 = vld [vmem:[%s566_s1 + $0x64] ss:$8 sps:$4 sm:$0xff]   ;;  %v391_v14 = vld [vmem:[%s566_s1 + $0x60] ss:$8 sps:$4 sm:$0xff]   ;;  %v392_v15 = vld [vmem:[%s566_s1 + $0x74] ss:$8 sps:$4 sm:$0xff]  }
   0x6   :  { %v421_v13 = vld [vmem:[%s567_s0 + $0x4] ss:$8 sps:$4 sm:$0xff]   ;;  %v394_v16 = vld [vmem:[%s566_s1 + $0x70] ss:$8 sps:$4 sm:$0xff]   ;;  %v397_v18 = vld [vmem:[%s566_s1 + $0x80] ss:$8 sps:$4 sm:$0xff]  }
   0x7   :  { %221 = vmatpush1.bf16.msra.mxu0 %v376_v3  ;;  %250 = vmatprep.mubr.bf16.mxu0 %v421_v13  ;;  %v395_v17 = vld [vmem:[%s566_s1 + $0x84] ss:$8 sps:$4 sm:$0xff]   ;;  %v398_v19 = vld [vmem:[%s566_s1 + $0x94] ss:$8 sps:$4 sm:$0xff]   ;;  %v400_v20 = vld [vmem:[%s566_s1 + $0x90] ss:$8 sps:$4 sm:$0xff]  }
   0x8   :  { %222 = vmatprep.subr.bf16.mxu0 %v377_v4  ;;  %v401_v21 = vld [vmem:[%s566_s1 + $0xa4] ss:$8 sps:$4 sm:$0xff]   ;;  %v403_v22 = vld [vmem:[%s566_s1 + $0xa0] ss:$8 sps:$4 sm:$0xff]   ;;  %v404_v23 = vld [vmem:[%s566_s1 + $0xb4] ss:$8 sps:$4 sm:$0xff]  }
   0x9   :  { %v406_v24 = vld [vmem:[%s566_s1 + $0xb0] ss:$8 sps:$4 sm:$0xff]   ;;  %v407_v25 = vld [vmem:[%s566_s1 + $0xc4] ss:$8 sps:$4 sm:$0xff]   ;;  %v409_v26 = vld [vmem:[%s566_s1 + $0xc0] ss:$8 sps:$4 sm:$0xff]  }
   0xa   :  { %v410_v27 = vld [vmem:[%s566_s1 + $0xd4] ss:$8 sps:$4 sm:$0xff]   ;;  %v412_v28 = vld [vmem:[%s566_s1 + $0xd0] ss:$8 sps:$4 sm:$0xff]   ;;  %v413_v29 = vld [vmem:[%s566_s1 + $0xe4] ss:$8 sps:$4 sm:$0xff]  }
   0xb   :  { %223 = vmatpush1.bf16.msra.mxu0 %v379_v5  ;;  %v415_v30 = vld [vmem:[%s566_s1 + $0xe0] ss:$8 sps:$4 sm:$0xff]   ;;  %v416_v31 = vld [vmem:[%s566_s1 + $0xf4] ss:$8 sps:$4 sm:$0xff]   ;;  %v418_v32 = vld [vmem:[%s566_s1 + $0xf0] ss:$8 sps:$4 sm:$0xff]  }
   0xc   :  { %224 = vmatprep.subr.bf16.mxu0 %v380_v6  ;;  %v419_v33 = vld [vmem:[%s567_s0] ss:$8 sps:$4 sm:$0xff]  }
   0xf   :  { %225 = vmatpush1.bf16.msra.mxu0 %v382_v7 }
  0x10   :  { %226 = vmatprep.subr.bf16.mxu0 %v383_v8 }
  0x13   :  { %227 = vmatpush1.bf16.msra.mxu0 %v385_v9 }
  0x14   :  { %228 = vmatprep.subr.bf16.mxu0 %v386_v10 }
  0x17   :  { %229 = vmatpush1.bf16.msra.mxu0 %v388_v11 }
  0x18   :  { %230 = vmatprep.subr.bf16.mxu0 %v389_v12 }
  0x1b   :  { %231 = vmatpush1.bf16.msra.mxu0 %v391_v14 }
  0x1c   :  { %232 = vmatprep.subr.bf16.mxu0 %v392_v15 }
  0x1f   :  { %233 = vmatpush1.bf16.msra.mxu0 %v394_v16 }
  0x20   :  { %234 = vmatprep.subr.bf16.mxu0 %v395_v17 }
  0x23   :  { %235 = vmatpush1.bf16.msra.mxu0 %v397_v18 }
  0x24   :  { %236 = vmatprep.subr.bf16.mxu0 %v398_v19 }
  0x27   :  { %237 = vmatpush1.bf16.msra.mxu0 %v400_v20 }
  0x28   :  { %238 = vmatprep.subr.bf16.mxu0 %v401_v21 }
  0x2b   :  { %239 = vmatpush1.bf16.msra.mxu0 %v403_v22 }
  0x2c   :  { %240 = vmatprep.subr.bf16.mxu0 %v404_v23 }
  0x2f   :  { %241 = vmatpush1.bf16.msra.mxu0 %v406_v24 }
  0x30   :  { %242 = vmatprep.subr.bf16.mxu0 %v407_v25 }
  0x33   :  { %243 = vmatpush1.bf16.msra.mxu0 %v409_v26 }
  0x34   :  { %244 = vmatprep.subr.bf16.mxu0 %v410_v27 }
  0x37   :  { %245 = vmatpush1.bf16.msra.mxu0 %v412_v28 }
  0x38   :  { %246 = vmatprep.subr.bf16.mxu0 %v413_v29 }
  0x3b   :  { %247 = vmatpush1.bf16.msra.mxu0 %v415_v30 }
  0x3c   :  { %248 = vmatprep.subr.bf16.mxu0 %v416_v31 }
  0x3f   :  { %249 = vmatpush1.bf16.msra.mxu0 %v418_v32 }
  0x42   :  { %251 = vmatmul.mubr.bf16.vlgmr.msra.gmra.mrb[0].mxu0 %v419_v33 }
 0x115   :  { %v252_v34 = vpop.f32.mrb[0].mxu0 }
 0x116   :  { %v261_v35 = vmul.f32 %v252_v34, %v252_v34  ;;  %v254_v36 = vpop.f32.mrb[1].mxu0 }
 0x117   :  { %v262_v37 = vmul.f32 %v254_v36, %v254_v36  ;;  %v256_v38 = vpop.f32.mrb[2].mxu0 }
 0x118   :  { %v263_v39 = vmul.f32 %v256_v38, %v256_v38  ;;  %v258_v40 = vpop.f32.mrb[3].mxu0 }
 0x119   :  { %v264_v41 = vmul.f32 %v258_v40, %v258_v40  ;;  %v265_v42 = vadd.f32 %v262_v37, %v261_v35 }
 0x11b   :  { %266 = vadd.xlane.f32.xlu0 %v265_v42  ;;  %v268_v43 = vadd.f32 %v264_v41, %v263_v39 }
 0x11f   :  { %269 = vadd.xlane.f32.xlu0 %v268_v43 }
 0x1a8   :  { %v267_v44 = vpop.xlane.xlu0 %266 }
 0x1a9   :  { %v271_v45 = vadd.f32 1e-12, %v267_v44 }
 0x1ab   :  { %422 = vrsqrt.f32 %v271_v45 }
 0x1ac   :  { %v270_v46 = vpop.xlane.xlu0 %269 }
 0x1ad   :  { %v272_v47 = vadd.f32 1e-12, %v270_v46 }
 0x1af   :  { %424 = vrsqrt.f32 %v272_v47 }
 0x1b5   :  { %v423_v48 = vpop.eup %422 }
 0x1b6   :  { %v276_v49 = vmul.f32 %v423_v48, %v254_v36  ;;  %v275_v50 = vmul.f32 %v423_v48, %v252_v34 }
 0x1b8   :  { %280 = vst [vmem:[%s568_s2 + $0x8] sm:$0xff] %v276_v49  ;;  %279 = vst [vmem:[%s568_s2] sm:$0xff] %v275_v50 }
 0x1b9   :  { %v425_v51 = vpop.eup %424 }
 0x1ba   :  { %v278_v52 = vmul.f32 %v425_v51, %v258_v40  ;;  %v277_v53 = vmul.f32 %v425_v51, %v256_v38 }
 0x1bc   :  { %282 = vst [vmem:[%s568_s2 + $0x18] sm:$0xff] %v278_v52  ;;  %v284_v54 = vpack.c.bf16 %v278_v52, %v276_v49  ;;  %281 = vst [vmem:[%s568_s2 + $0x10] sm:$0xff] %v277_v53  ;;  %v283_v55 = vpack.c.bf16 %v277_v53, %v275_v50 }
 0x1be   :  { %285 = vmatprep.subr.bf16.mxu1 %v284_v54  ;;  %317 = vmatprep.mubr.bf16.mxu1 %v284_v54 }
 0x1bf   :  { %286 = vmatpush1.bf16.xpose.msra.mxu1 %v283_v55 }
 0x1c6   :  { %318 = vmatmul.mubr.bf16.vlgmr.msra.gmra.mrb[0].mxu1 %v283_v55 }
 0x299   :  { %v319_v56 = vpop.f32.mrb[0].mxu1 }
 0x29a   :  { %327 = vst.msk [vmem:[%s569_s3] sm:$0xff] %vm326_vm0, %v319_v56  ;;  %v321_v57 = vpop.f32.mrb[1].mxu1 }
 0x29b   :  { %v322_v58 = vpop.f32.mrb[2].mxu1 }
 0x29c   :  { %328 = vst.msk [vmem:[%s569_s3 + $0x8] sm:$0xff] %vm326_vm0, %v322_v58  ;;  %v324_v59 = vpop.f32.mrb[3].mxu1 }

</bundles_post_ra>
